<compile_context>
chip_gen: v7x
topology: tpu7x:2x2x1
jax: 0.10.0
libtpu: 0.0.40
codegen_flags: <defaults>
</compile_context>

<pallas_src>
import functools

import jax
import jax.numpy as jnp
from jax.experimental import pallas as pl
from jax.experimental.pallas import tpu as pltpu


def _round_up(x, m):
    return ((x + m - 1) // m) * m


def _conv_heads_kernel(xm_ref, xh_ref, wc_ref, bc_ref, wh_ref, bh_ref, out_ref,
                       slab_ref, *, offsets, c_in, tm, compute_dtype):
    """One grid step: `tm` token positions (tokens on the LANE axis).

    xm_ref  : (C, tm)      main slab of the flattened, zero-padded input columns
    xh_ref  : (C, halo_w)  halo = columns immediately to the right of the main slab
    wc_ref  : (CE, 9*C)    conv weight; column (di*3+dj)*C + c  <->  W[:, c, di, dj]
    bc_ref  : (CE, 1)      conv bias (f32)
    wh_ref  : (NH, CE)     fused bbox|cls head weight (NH = 7)
    bh_ref  : (NH, 1)      fused head bias (f32)
    out_ref : (NH, tm)     lane-dense output tile
    slab_ref: (9*C, tm)    VMEM scratch: im2col tap slab (the matmul RHS)
    """
    xm = xm_ref[...]                                   # (C, tm)
    xh = xh_ref[...]                                   # (C, halo_w)

    # Build the (9*C, tm) im2col slab.  Tap k = di*3 + dj occupies sublane rows
    # [k*C, (k+1)*C); its columns are the input window shifted left by off = di*Wp + dj.
    # The first (tm - off) columns come from the main slab, the trailing `off` columns
    # from the halo slab.  All slices are static; Mosaic lowers them as lane rotates +
    # masked stores, written directly into the matmul RHS (no intermediate concat copy).
    for k, off in enumerate(offsets):
        rows = pl.ds(k * c_in, c_in)
        if off == 0:
            slab_ref[rows, pl.ds(0, tm)] = xm
        else:
            slab_ref[rows, pl.ds(0, tm - off)] = xm[:, off:]
            slab_ref[rows, pl.ds(tm - off, off)] = xh[:, :off]

    # Single fused K = 9*C conv matmul on the MXU, f32 accumulation.
    emb = jnp.dot(wc_ref[...], slab_ref[...], preferred_element_type=jnp.float32)
    emb = jnp.maximum(emb + bc_ref[...], 0.0)          # bias + ReLU in f32 (VPU)

    # Fused bbox|cls head: one (NH, CE) @ (CE, tm) matmul, f32 bias.
    out = jnp.dot(wh_ref[...], emb.astype(compute_dtype),
                  preferred_element_type=jnp.float32) + bh_ref[...]
    out_ref[...] = out.astype(out_ref.dtype)           # (NH, tm) full-lane stores


@functools.partial(jax.jit, static_argnames=("tm", "compute_dtype", "out_dtype"))
def single_obj_geospatial_detector_forward(x, params, *, tm=1024,
                                           compute_dtype=jnp.bfloat16,
                                           out_dtype=jnp.float32):
    """x: [B, C_in, H, W] (NCHW). Returns {'bbox': [B, H*W, 4], 'cls': [B, H*W, 3]}."""
    B, C, H, W = x.shape
    w_conv = params["conv_weight"]                     # (CE, C, 3, 3) torch layout
    b_conv = params["conv_bias"]                       # (CE,)
    w_bbox = params["bbox_weight"]                     # (NB, CE)
    b_bbox = params["bbox_bias"]                       # (NB,)
    w_cls = params["cls_weight"]                       # (NC, CE)
    b_cls = params["cls_bias"]                         # (NC,)
    CE = w_conv.shape[0]
    NB = w_bbox.shape[0]
    NC = w_cls.shape[0]
    NH = NB + NC                                       # fused head rows (no pad row)

    Hp, Wp = H + 2, W + 2                              # spatially zero-padded image
    Mp = B * Hp * Wp                                   # flattened padded positions
    halo_w = _round_up(2 * Wp + 2, 128)                # max tap offset, lane-rounded

    # Token tile: free multiple of 128 (decoupled from halo_w), at least halo_w so every
    # tap offset stays inside one tile, shrunk for tiny inputs so we still get >= 2
    # balanced grid steps, capped by the caller's request (sweep 1024-4096 for real H,W).
    tm = max(min(tm, _round_up(pl.cdiv(Mp, 2), 128)), halo_w)
    tm = _round_up(tm, 128)
    n_steps = pl.cdiv(Mp, tm)
    n_steps += n_steps % 2                             # even step count for v7x's 2 TCs
    Mtot = n_steps * tm
    w_cols = (n_steps + 1) * tm                        # incl. right zero margin >= halo_w

    # ---- host-side prep (jitted; cast first so the pads/copies move bf16 bytes) ----
    x_c = x.astype(compute_dtype)
    x_pad = jnp.pad(x_c, ((0, 0), (0, 0), (1, 1), (1, 1)))            # (B, C, Hp, Wp)
    x_flat = x_pad.transpose(1, 0, 2, 3).reshape(C, Mp)               # (C, Mp)
    x_cols = jnp.pad(x_flat, ((0, 0), (0, w_cols - Mp)))              # (C, w_cols)
    # Per-step halo columns: x_halo[:, i*halo_w + j] == x_cols[:, (i+1)*tm + j].
    # Small (halo_w/tm of the input); keeps tm fully decoupled from the halo width.
    x_halo = (x_cols[:, tm:(n_steps + 1) * tm]
              .reshape(C, n_steps, tm)[:, :, :halo_w]
              .reshape(C, n_steps * halo_w))

    # Conv weight as one clean (CE, 9*C) LHS tile; column (di*3+dj)*C + c = W[:, c, di, dj].
    wc = jnp.transpose(w_conv, (0, 2, 3, 1)).reshape(CE, 9 * C).astype(compute_dtype)
    bc = b_conv.reshape(CE, 1).astype(jnp.float32)
    # Fused (bbox | cls) head - no zero pad row in the output stream.
    wh = jnp.concatenate([w_bbox, w_cls], axis=0).astype(compute_dtype)   # (NH, CE)
    bh = jnp.concatenate([b_bbox, b_cls]).reshape(NH, 1).astype(jnp.float32)

    # Static flat-column offsets of the 9 taps (top-left-corner formulation: output token
    # q = b*Hp*Wp + oi*Wp + oj holds the conv output for pixel (oi, oj), oi < H, oj < W).
    offsets = tuple(di * Wp + dj for di in range(3) for dj in range(3))

    kernel = functools.partial(_conv_heads_kernel, offsets=offsets, c_in=C,
                               tm=tm, compute_dtype=compute_dtype)

    out = pl.pallas_call(
        kernel,
        out_shape=jax.ShapeDtypeStruct((NH, Mtot), out_dtype),
        grid_spec=pltpu.PrefetchScalarGridSpec(
            num_scalar_prefetch=0,
            grid=(n_steps,),
            in_specs=[
                pl.BlockSpec((C, tm), lambda i: (0, i)),            # main slab
                pl.BlockSpec((C, halo_w), lambda i: (0, i)),        # halo slab
                pl.BlockSpec((CE, 9 * C), lambda i: (0, 0)),        # conv weight
                pl.BlockSpec((CE, 1), lambda i: (0, 0)),            # conv bias
                pl.BlockSpec((NH, CE), lambda i: (0, 0)),           # head weight
                pl.BlockSpec((NH, 1), lambda i: (0, 0)),            # head bias
            ],
            out_specs=pl.BlockSpec((NH, tm), lambda i: (0, i)),
            scratch_shapes=[pltpu.VMEM((9 * C, tm), compute_dtype)],
        ),
        compiler_params=pltpu.CompilerParams(
            dimension_semantics=("parallel",)),
    )(x_cols, x_halo, wc, bc, wh, bh)

    # ---- jitted epilogue: drop padded/border positions, split the fused heads ----
    out = out[:, :Mp].astype(jnp.float32).reshape(NH, B, Hp, Wp)[:, :, :H, :W]
    out = out.transpose(1, 2, 3, 0).reshape(B, H * W, NH)
    return {"bbox": out[..., :NB], "cls": out[..., NB:NB + NC]}


def _reference_forward(x, params, compute_dtype=jnp.float32):
    """Pure-jnp im2col reference mirroring the kernel's dtype path exactly."""
    B, C, H, W = x.shape
    CE = params["conv_weight"].shape[0]
    NB = params["bbox_weight"].shape[0]
    hp = jax.lax.Precision.HIGHEST

    x_pad = jnp.pad(x.astype(compute_dtype), ((0, 0), (0, 0), (1, 1), (1, 1)))
    taps = [x_pad[:, :, di:di + H, dj:dj + W] for di in range(3) for dj in range(3)]
    patches = jnp.stack(taps, axis=1).reshape(B, 9 * C, H * W)           # (B, 9C, HW)
    wc = jnp.transpose(params["conv_weight"], (0, 2, 3, 1)).reshape(CE, 9 * C)
    wc = wc.astype(compute_dtype).astype(jnp.float32)

    emb = jnp.einsum("ef,bfm->bem", wc, patches.astype(jnp.float32), precision=hp)
    emb = jnp.maximum(emb + params["conv_bias"].reshape(1, CE, 1), 0.0)
    emb = emb.astype(compute_dtype).astype(jnp.float32)

    wh = jnp.concatenate([params["bbox_weight"], params["cls_weight"]], axis=0)
    wh = wh.astype(compute_dtype).astype(jnp.float32)
    bh = jnp.concatenate([params["bbox_bias"], params["cls_bias"]])
    out = jnp.einsum("ne,bem->bnm", wh, emb, precision=hp) + bh.reshape(1, -1, 1)
    out = out.transpose(0, 2, 1)                                          # (B, HW, NB+NC)
    return {"bbox": out[..., :NB], "cls": out[..., NB:]}


def init_params(key, c_in=4, c_emb=32, n_cls=3, n_box=4):
    """Deterministic synthetic weights in PyTorch-native layouts."""
    k1, k2, k3, k4, k5, k6 = jax.random.split(key, 6)
    return {
        "conv_weight": jax.random.normal(k1, (c_emb, c_in, 3, 3), jnp.float32) * 0.1,
        "conv_bias": jax.random.normal(k2, (c_emb,), jnp.float32) * 0.1,
        "bbox_weight": jax.random.normal(k3, (n_box, c_emb), jnp.float32) * 0.1,
        "bbox_bias": jax.random.normal(k4, (n_box,), jnp.float32) * 0.1,
        "cls_weight": jax.random.normal(k5, (n_cls, c_emb), jnp.float32) * 0.1,
        "cls_bias": jax.random.normal(k6, (n_cls,), jnp.float32) * 0.1,
    }


if __name__ == "__main__":
    key = jax.random.PRNGKey(0)
    kx, kp = jax.random.split(key)
    # Small shapes consistent with the module: batch=2, channels=4, spatial=16x16 (NCHW).
    x = jax.random.normal(kx, (2, 4, 16, 16), jnp.float32)
    params = init_params(kp, c_in=4, c_emb=32, n_cls=3, n_box=4)

    # Default path: bf16 operands, f32 accumulation, f32 outputs.
    preds = jax.block_until_ready(single_obj_geospatial_detector_forward(x, params))
    assert preds["bbox"].shape == (2, 256, 4)
    assert preds["cls"].shape == (2, 256, 3)
    ref_bf16 = _reference_forward(x, params, compute_dtype=jnp.bfloat16)
    assert bool(jnp.allclose(preds["bbox"], ref_bf16["bbox"], atol=2e-2, rtol=2e-2))
    assert bool(jnp.allclose(preds["cls"], ref_bf16["cls"], atol=2e-2, rtol=2e-2))

    # Full-f32 path with a tight tolerance (catches halo/indexing/layout regressions).
    preds32 = jax.block_until_ready(
        single_obj_geospatial_detector_forward(x, params, compute_dtype=jnp.float32))
    ref32 = _reference_forward(x, params, compute_dtype=jnp.float32)
    assert bool(jnp.allclose(preds32["bbox"], ref32["bbox"], atol=5e-3, rtol=5e-3))
    assert bool(jnp.allclose(preds32["cls"], ref32["cls"], atol=5e-3, rtol=5e-3))

    print("KERNEL_OK")
</pallas_src>

<mosaic_0001>
module attributes {stable_mosaic.version = 11 : i64} {
  func.func @_conv_heads_kernel(%arg0: i32, %arg1: memref<4x384xbf16, #tpu.memory_space<vmem>>, %arg2: memref<4x128xbf16, #tpu.memory_space<vmem>>, %arg3: memref<32x36xbf16, #tpu.memory_space<vmem>>, %arg4: memref<32x1xf32, #tpu.memory_space<vmem>>, %arg5: memref<7x32xbf16, #tpu.memory_space<vmem>>, %arg6: memref<7x1xf32, #tpu.memory_space<vmem>>, %arg7: memref<7x384xf32, #tpu.memory_space<vmem>>, %arg8: memref<36x384xbf16, #tpu.memory_space<vmem>>) attributes {dimension_semantics = [#tpu.dimension_semantics<parallel>], iteration_bounds = array<i64: 2>, scalar_prefetch = 0 : i64, scratch_operands = 1 : i64, tpu.core_type = #tpu.core_type<tc>, window_params = [{transform_indices = @transform_0, window_bounds = array<i64: 4, 384>}, {transform_indices = @transform_1, window_bounds = array<i64: 4, 128>}, {pipeline_mode = #tpu.pipeline_mode<synchronous>, transform_indices = @transform_2, window_bounds = array<i64: 32, 36>}, {pipeline_mode = #tpu.pipeline_mode<synchronous>, transform_indices = @transform_3, window_bounds = array<i64: 32, 1>}, {pipeline_mode = #tpu.pipeline_mode<synchronous>, transform_indices = @transform_4, window_bounds = array<i64: 7, 32>}, {pipeline_mode = #tpu.pipeline_mode<synchronous>, transform_indices = @transform_5, window_bounds = array<i64: 7, 1>}, {transform_indices = @transform_6, window_bounds = array<i64: 7, 384>}]} {
    %c0 = arith.constant 0 : index
    %c0_0 = arith.constant 0 : index
    %0 = vector.load %arg1[%c0, %c0_0] : memref<4x384xbf16, #tpu.memory_space<vmem>>, vector<4x384xbf16>
    %c0_1 = arith.constant 0 : index
    %c0_2 = arith.constant 0 : index
    %1 = vector.load %arg2[%c0_1, %c0_2] : memref<4x128xbf16, #tpu.memory_space<vmem>>, vector<4x128xbf16>
    %c0_3 = arith.constant 0 : index
    %c0_4 = arith.constant 0 : index
    %2 = vector.load %arg8[%c0_3, %c0_4] : memref<36x384xbf16, #tpu.memory_space<vmem>>, vector<4x384xbf16>
    tpu.vector_store %arg8[%c0_3, %c0_4], %0 {strides = array<i32>} : memref<36x384xbf16, #tpu.memory_space<vmem>>, vector<4x384xbf16>,
    %3 = vector.extract_strided_slice %0 {offsets = [0, 1], sizes = [4, 383], strides = [1, 1]} : vector<4x384xbf16> to vector<4x383xbf16>
    %c4 = arith.constant 4 : index
    %c0_5 = arith.constant 0 : index
    %4 = vector.load %arg8[%c4, %c0_5] : memref<36x384xbf16, #tpu.memory_space<vmem>>, vector<4x383xbf16>
    tpu.vector_store %arg8[%c4, %c0_5], %3 {strides = array<i32>} : memref<36x384xbf16, #tpu.memory_space<vmem>>, vector<4x383xbf16>,
    %5 = vector.extract_strided_slice %1 {offsets = [0, 0], sizes = [4, 1], strides = [1, 1]} : vector<4x128xbf16> to vector<4x1xbf16>
    %c4_6 = arith.constant 4 : index
    %c383 = arith.constant 383 : index
    %6 = vector.load %arg8[%c4_6, %c383] : memref<36x384xbf16, #tpu.memory_space<vmem>>, vector<4x1xbf16>
    tpu.vector_store %arg8[%c4_6, %c383], %5 {strides = array<i32>} : memref<36x384xbf16, #tpu.memory_space<vmem>>, vector<4x1xbf16>,
    %7 = vector.extract_strided_slice %0 {offsets = [0, 2], sizes = [4, 382], strides = [1, 1]} : vector<4x384xbf16> to vector<4x382xbf16>
    %c8 = arith.constant 8 : index
    %c0_7 = arith.constant 0 : index
    %8 = vector.load %arg8[%c8, %c0_7] : memref<36x384xbf16, #tpu.memory_space<vmem>>, vector<4x382xbf16>
    tpu.vector_store %arg8[%c8, %c0_7], %7 {strides = array<i32>} : memref<36x384xbf16, #tpu.memory_space<vmem>>, vector<4x382xbf16>,
    %9 = vector.extract_strided_slice %1 {offsets = [0, 0], sizes = [4, 2], strides = [1, 1]} : vector<4x128xbf16> to vector<4x2xbf16>
    %c8_8 = arith.constant 8 : index
    %c382 = arith.constant 382 : index
    %10 = vector.load %arg8[%c8_8, %c382] : memref<36x384xbf16, #tpu.memory_space<vmem>>, vector<4x2xbf16>
    tpu.vector_store %arg8[%c8_8, %c382], %9 {strides = array<i32>} : memref<36x384xbf16, #tpu.memory_space<vmem>>, vector<4x2xbf16>,
    %11 = vector.extract_strided_slice %0 {offsets = [0, 18], sizes = [4, 366], strides = [1, 1]} : vector<4x384xbf16> to vector<4x366xbf16>
    %c12 = arith.constant 12 : index
    %c0_9 = arith.constant 0 : index
    %12 = vector.load %arg8[%c12, %c0_9] : memref<36x384xbf16, #tpu.memory_space<vmem>>, vector<4x366xbf16>
    tpu.vector_store %arg8[%c12, %c0_9], %11 {strides = array<i32>} : memref<36x384xbf16, #tpu.memory_space<vmem>>, vector<4x366xbf16>,
    %13 = vector.extract_strided_slice %1 {offsets = [0, 0], sizes = [4, 18], strides = [1, 1]} : vector<4x128xbf16> to vector<4x18xbf16>
    %c12_10 = arith.constant 12 : index
    %c366 = arith.constant 366 : index
    %14 = vector.load %arg8[%c12_10, %c366] : memref<36x384xbf16, #tpu.memory_space<vmem>>, vector<4x18xbf16>
    tpu.vector_store %arg8[%c12_10, %c366], %13 {strides = array<i32>} : memref<36x384xbf16, #tpu.memory_space<vmem>>, vector<4x18xbf16>,
    %15 = vector.extract_strided_slice %0 {offsets = [0, 19], sizes = [4, 365], strides = [1, 1]} : vector<4x384xbf16> to vector<4x365xbf16>
    %c16 = arith.constant 16 : index
    %c0_11 = arith.constant 0 : index
    %16 = vector.load %arg8[%c16, %c0_11] : memref<36x384xbf16, #tpu.memory_space<vmem>>, vector<4x365xbf16>
    tpu.vector_store %arg8[%c16, %c0_11], %15 {strides = array<i32>} : memref<36x384xbf16, #tpu.memory_space<vmem>>, vector<4x365xbf16>,
    %17 = vector.extract_strided_slice %1 {offsets = [0, 0], sizes = [4, 19], strides = [1, 1]} : vector<4x128xbf16> to vector<4x19xbf16>
    %c16_12 = arith.constant 16 : index
    %c365 = arith.constant 365 : index
    %18 = vector.load %arg8[%c16_12, %c365] : memref<36x384xbf16, #tpu.memory_space<vmem>>, vector<4x19xbf16>
    tpu.vector_store %arg8[%c16_12, %c365], %17 {strides = array<i32>} : memref<36x384xbf16, #tpu.memory_space<vmem>>, vector<4x19xbf16>,
    %19 = vector.extract_strided_slice %0 {offsets = [0, 20], sizes = [4, 364], strides = [1, 1]} : vector<4x384xbf16> to vector<4x364xbf16>
    %c20 = arith.constant 20 : index
    %c0_13 = arith.constant 0 : index
    %20 = vector.load %arg8[%c20, %c0_13] : memref<36x384xbf16, #tpu.memory_space<vmem>>, vector<4x364xbf16>
    tpu.vector_store %arg8[%c20, %c0_13], %19 {strides = array<i32>} : memref<36x384xbf16, #tpu.memory_space<vmem>>, vector<4x364xbf16>,
    %21 = vector.extract_strided_slice %1 {offsets = [0, 0], sizes = [4, 20], strides = [1, 1]} : vector<4x128xbf16> to vector<4x20xbf16>
    %c20_14 = arith.constant 20 : index
    %c364 = arith.constant 364 : index
    %22 = vector.load %arg8[%c20_14, %c364] : memref<36x384xbf16, #tpu.memory_space<vmem>>, vector<4x20xbf16>
    tpu.vector_store %arg8[%c20_14, %c364], %21 {strides = array<i32>} : memref<36x384xbf16, #tpu.memory_space<vmem>>, vector<4x20xbf16>,
    %23 = vector.extract_strided_slice %0 {offsets = [0, 36], sizes = [4, 348], strides = [1, 1]} : vector<4x384xbf16> to vector<4x348xbf16>
    %c24 = arith.constant 24 : index
    %c0_15 = arith.constant 0 : index
    %24 = vector.load %arg8[%c24, %c0_15] : memref<36x384xbf16, #tpu.memory_space<vmem>>, vector<4x348xbf16>
    tpu.vector_store %arg8[%c24, %c0_15], %23 {strides = array<i32>} : memref<36x384xbf16, #tpu.memory_space<vmem>>, vector<4x348xbf16>,
    %25 = vector.extract_strided_slice %1 {offsets = [0, 0], sizes = [4, 36], strides = [1, 1]} : vector<4x128xbf16> to vector<4x36xbf16>
    %c24_16 = arith.constant 24 : index
    %c348 = arith.constant 348 : index
    %26 = vector.load %arg8[%c24_16, %c348] : memref<36x384xbf16, #tpu.memory_space<vmem>>, vector<4x36xbf16>
    tpu.vector_store %arg8[%c24_16, %c348], %25 {strides = array<i32>} : memref<36x384xbf16, #tpu.memory_space<vmem>>, vector<4x36xbf16>,
    %27 = vector.extract_strided_slice %0 {offsets = [0, 37], sizes = [4, 347], strides = [1, 1]} : vector<4x384xbf16> to vector<4x347xbf16>
    %c28 = arith.constant 28 : index
    %c0_17 = arith.constant 0 : index
    %28 = vector.load %arg8[%c28, %c0_17] : memref<36x384xbf16, #tpu.memory_space<vmem>>, vector<4x347xbf16>
    tpu.vector_store %arg8[%c28, %c0_17], %27 {strides = array<i32>} : memref<36x384xbf16, #tpu.memory_space<vmem>>, vector<4x347xbf16>,
    %29 = vector.extract_strided_slice %1 {offsets = [0, 0], sizes = [4, 37], strides = [1, 1]} : vector<4x128xbf16> to vector<4x37xbf16>
    %c28_18 = arith.constant 28 : index
    %c347 = arith.constant 347 : index
    %30 = vector.load %arg8[%c28_18, %c347] : memref<36x384xbf16, #tpu.memory_space<vmem>>, vector<4x37xbf16>
    tpu.vector_store %arg8[%c28_18, %c347], %29 {strides = array<i32>} : memref<36x384xbf16, #tpu.memory_space<vmem>>, vector<4x37xbf16>,
    %31 = vector.extract_strided_slice %0 {offsets = [0, 38], sizes = [4, 346], strides = [1, 1]} : vector<4x384xbf16> to vector<4x346xbf16>
    %c32 = arith.constant 32 : index
    %c0_19 = arith.constant 0 : index
    %32 = vector.load %arg8[%c32, %c0_19] : memref<36x384xbf16, #tpu.memory_space<vmem>>, vector<4x346xbf16>
    tpu.vector_store %arg8[%c32, %c0_19], %31 {strides = array<i32>} : memref<36x384xbf16, #tpu.memory_space<vmem>>, vector<4x346xbf16>,
    %33 = vector.extract_strided_slice %1 {offsets = [0, 0], sizes = [4, 38], strides = [1, 1]} : vector<4x128xbf16> to vector<4x38xbf16>
    %c32_20 = arith.constant 32 : index
    %c346 = arith.constant 346 : index
    %34 = vector.load %arg8[%c32_20, %c346] : memref<36x384xbf16, #tpu.memory_space<vmem>>, vector<4x38xbf16>
    tpu.vector_store %arg8[%c32_20, %c346], %33 {strides = array<i32>} : memref<36x384xbf16, #tpu.memory_space<vmem>>, vector<4x38xbf16>,
    %c0_21 = arith.constant 0 : index
    %c0_22 = arith.constant 0 : index
    %35 = vector.load %arg3[%c0_21, %c0_22] : memref<32x36xbf16, #tpu.memory_space<vmem>>, vector<32x36xbf16>
    %c0_23 = arith.constant 0 : index
    %c0_24 = arith.constant 0 : index
    %36 = vector.load %arg8[%c0_23, %c0_24] : memref<36x384xbf16, #tpu.memory_space<vmem>>, vector<36x384xbf16>
    %cst = arith.constant dense<0.000000e+00> : vector<32x384xf32>
    %37 = tpu.matmul %35, %36, %cst {dimension_numbers = #tpu.dot_dimension_numbers<[1], [0], [0], [1], [0, 0, 1, 1], [], []>} : vector<32x36xbf16>, vector<36x384xbf16>, vector<32x384xf32> -> vector<32x384xf32>
    %c0_25 = arith.constant 0 : index
    %c0_26 = arith.constant 0 : index
    %38 = vector.load %arg4[%c0_25, %c0_26] : memref<32x1xf32, #tpu.memory_space<vmem>>, vector<32x1xf32>
    %39 = vector.broadcast %38 : vector<32x1xf32> to vector<32x384xf32>
    %40 = arith.addf %37, %39 : vector<32x384xf32>
    %cst_27 = arith.constant 0.000000e+00 : f32
    %41 = vector.broadcast %cst_27 : f32 to vector<32x384xf32>
    %42 = arith.maximumf %40, %41 : vector<32x384xf32>
    %c0_28 = arith.constant 0 : index
    %c0_29 = arith.constant 0 : index
    %43 = vector.load %arg5[%c0_28, %c0_29] : memref<7x32xbf16, #tpu.memory_space<vmem>>, vector<7x32xbf16>
    %44 = arith.truncf %42 : vector<32x384xf32> to vector<32x384xbf16>
    %cst_30 = arith.constant dense<0.000000e+00> : vector<7x384xf32>
    %45 = tpu.matmul %43, %44, %cst_30 {dimension_numbers = #tpu.dot_dimension_numbers<[1], [0], [0], [1], [0, 0, 1, 1], [], []>} : vector<7x32xbf16>, vector<32x384xbf16>, vector<7x384xf32> -> vector<7x384xf32>
    %c0_31 = arith.constant 0 : index
    %c0_32 = arith.constant 0 : index
    %46 = vector.load %arg6[%c0_31, %c0_32] : memref<7x1xf32, #tpu.memory_space<vmem>>, vector<7x1xf32>
    %47 = vector.broadcast %46 : vector<7x1xf32> to vector<7x384xf32>
    %48 = arith.addf %45, %47 : vector<7x384xf32>
    %c0_33 = arith.constant 0 : index
    %c0_34 = arith.constant 0 : index
    %49 = vector.load %arg7[%c0_33, %c0_34] : memref<7x384xf32, #tpu.memory_space<vmem>>, vector<7x384xf32>
    tpu.vector_store %arg7[%c0_33, %c0_34], %48 {strides = array<i32>} : memref<7x384xf32, #tpu.memory_space<vmem>>, vector<7x384xf32>,
    return
  }
  func.func @transform_0(%arg0: i32) -> (i32, i32) {
    %c0_i32 = arith.constant 0 : i32
    %c0_i32_0 = arith.constant 0 : i32
    return %c0_i32, %arg0 : i32, i32
  }
  func.func @transform_1(%arg0: i32) -> (i32, i32) {
    %c0_i32 = arith.constant 0 : i32
    %c0_i32_0 = arith.constant 0 : i32
    return %c0_i32, %arg0 : i32, i32
  }
  func.func @transform_2(%arg0: i32) -> (i32, i32) {
    %c0_i32 = arith.constant 0 : i32
    %c0_i32_0 = arith.constant 0 : i32
    %c0_i32_1 = arith.constant 0 : i32
    return %c0_i32, %c0_i32_0 : i32, i32
  }
  func.func @transform_3(%arg0: i32) -> (i32, i32) {
    %c0_i32 = arith.constant 0 : i32
    %c0_i32_0 = arith.constant 0 : i32
    %c0_i32_1 = arith.constant 0 : i32
    return %c0_i32, %c0_i32_0 : i32, i32
  }
  func.func @transform_4(%arg0: i32) -> (i32, i32) {
    %c0_i32 = arith.constant 0 : i32
    %c0_i32_0 = arith.constant 0 : i32
    %c0_i32_1 = arith.constant 0 : i32
    return %c0_i32, %c0_i32_0 : i32, i32
  }
  func.func @transform_5(%arg0: i32) -> (i32, i32) {
    %c0_i32 = arith.constant 0 : i32
    %c0_i32_0 = arith.constant 0 : i32
    %c0_i32_1 = arith.constant 0 : i32
    return %c0_i32, %c0_i32_0 : i32, i32
  }
  func.func @transform_6(%arg0: i32) -> (i32, i32) {
    %c0_i32 = arith.constant 0 : i32
    %c0_i32_0 = arith.constant 0 : i32
    return %c0_i32, %arg0 : i32, i32
  }
}

</mosaic_0001>

<bundles_post_ra>
// kernel: single_obj_geospatial_detector_forward.1
= control target key start
LH: loop header
LB: loop body
LE: loop exit
PB: predicated region body
PF: predicated region fallthrough
CT: control target
= control target key end

     0   :  { %s1006_s21 = smov 0   ;;  %s1098_s0 = inlined_call_operand.vmem [shape: bf16[4,1152], index: 0, kind: input, shape index: {}]   ;;  %s1099_s1 = inlined_call_operand.vmem [shape: bf16[4,256], index: 1, kind: input, shape index: {}]   ;;  %s1100_s2 = inlined_call_operand.vmem [shape: bf16[32,36], index: 2, kind: input, shape index: {}]   ;;  %s1101_s3 = inlined_call_operand.vmem [shape: f32[32,1], index: 3, kind: input, shape index: {}]   ;;  %s1102_s4 = inlined_call_operand.vmem [shape: bf16[7,32], index: 4, kind: input, shape index: {}]   ;;  %s1103_s5 = inlined_call_operand.vmem [shape: f32[7,1], index: 5, kind: input, shape index: {}]   ;;  %s1104_s6 = inlined_call_operand.vmem [shape: f32[7,768], index: 6, kind: output, shape index: {}]  }
   0x1 LB: > { %s1012_s22 = sadd.s32 4294967295, %s957_s21   ;;  %p864_p0 = scmp.ge.s32.totalorder %s957_s21, 1  ;;  %s957_s21 = sphi %s1006_s21, %s16_s21  }
   0x2   : > { %p222_p1 = scmp.lt.s32.totalorder %s957_s21, 3 }
   0x4   : > { %p223_p2 = pnand %p864_p0, %p222_p1 }
   0x5   : > { %s1017_s23 = smul.u32 (!%p223_p2), 3, %s1012_s22  ;;  %v280_v0 = vlaneseq (!%p223_p2)  ;;  %v959_v1 = vmov (!%p223_p2), 1983009808   ;;  %s960_s29 = smov (!%p223_p2), 126   ;;  %v1040_v16 = vld [vmem:[%s1100_s2] sm:$0xff] (!%p223_p2)   ;;  %vm560_vm0 = vcmask (!%p223_p2), 293888  }
   0x6   : > { %226 = sbr.rel (%p223_p2) target bundleno = 638 (0x27e), region = 44  ;;  %v278_v2 = vunpack.c.l.s4 (!%p223_p2), %v959_v1  ;;  %s961_s30 = smov (!%p223_p2), 127   ;;  %v968_v17 = vmov (!%p223_p2), 0   ;;  %904 = vmatprep.mubr.msk.bf16.mxu1 (!%p223_p2), %vm560_vm0, %v1040_v16  ;;  %v486_v18 = vld [vmem:[%s1101_s3] sm:$0xff] (!%p223_p2)  ;;  %v487_v19 = vld [vmem:[%s1101_s3 + $0x8] sm:$0xff] (!%p223_p2)  ;;  %v489_v20 = vld [vmem:[%s1101_s3 + $0x18] sm:$0xff] (!%p223_p2) }
   0x7   : > { %p257_p3 = scmp.lt.s32.totalorder (!%p223_p2), %s1017_s23, 8  ;;  %v281_v3 = vshrl.u32 (!%p223_p2), %v280_v0, 7  ;;  %s962_s7 = smov (!%p223_p2), 110   ;;  %609 = vmatprep.mubr.bf16.mxu0 (!%p223_p2), %v968_v17  ;;  %938 = vset.pattern.permute.xlu1 (!%p223_p2), %v968_v17  ;;  %v488_v21 = vld [vmem:[%s1101_s3 + $0x10] sm:$0xff] (!%p223_p2)  ;;  %v698_v22 = vld [vmem:[%s1103_s5] sm:$0x7f] (!%p223_p2) }
   0x8   : > { %v279_v4 = vunpack.c.0.s8 (!%p223_p2), %v278_v2  ;;  %s963_s8 = smov (!%p223_p2), 109   ;;  %p262_p4 = scmp.lt.s32.totalorder (!%p223_p2), %s1012_s22, 1  ;;  %937 = vset.pattern.permute.xlu0 (!%p223_p2), %v968_v17  ;;  %vm316_vm1 = vcmask (!%p223_p2), 1035266   ;;  %vm370_vm2 = vcmask (!%p223_p2), 896002   ;;  %vm344_vm3 = vcmask (!%p223_p2), 1025024  }
   0x9   : > { %s964_s10 = smov (!%p223_p2), 108   ;;  %s965_s14 = smov (!%p223_p2), 92   ;;  %vm309_vm4 = vcmask (!%p223_p2), 1043456   ;;  %vm311_vm5 = vcmask (!%p223_p2), 1039360   ;;  %vm339_vm6 = vcmask (!%p223_p2), 1031168   ;;  %vm389_vm7 = vcmask (!%p223_p2), 885760  }
   0xa   : > { %v282_v5 = vsub.s32 (!%p223_p2), %v279_v4, %v281_v3  ;;  %s966_s15 = smov (!%p223_p2), 91   ;;  %s967_s16 = smov (!%p223_p2), 90   ;;  %vm365_vm8 = vcmask (!%p223_p2), 900096   ;;  %vm384_vm9 = vcmask (!%p223_p2), 891904   ;;  %vm408_vm10 = vcmask (!%p223_p2), 879618  }
   0xb   : > { %vm403_vm11 = vcmask (!%p223_p2), 883712   ;;  %vm427_vm12 = vcmask (!%p223_p2), 746496   ;;  %vm422_vm13 = vcmask (!%p223_p2), 752640   ;;  %vm446_vm14 = vcmask (!%p223_p2), 740354   ;;  %p267_p5 = scmp.lt.s32.totalorder (!%p223_p2), %s1017_s23, 5 }
   0xc   : > { %vm441_vm15 = vcmask (!%p223_p2), 744448  }
   0xd   : > { %s258_s24 = scalar_select %p257_p3, %s1017_s23, 8 }
   0xe   : > { %s1106_s22 = smov (!%p262_p4, %s1012_s22), 1  ;;  %s1108_s23 = smov (!%p267_p5, %s1017_s23), 5 }
   0xf   : > { %s865_s25 = sshll.u32 %s258_s24, 1  ;;  %s866_s9 = sshll.u32 %s1106_s22, 1 }
  0x10   : > { %s260_s28 = scalar_lea.vmem %s1098_s0, %s865_s25  ;;  %s265_s13 = scalar_lea.vmem %s1099_s1, %s866_s9 }
  0x11   : > { %v273_v6 = vld [vmem:[%s260_s28] sm:$0x3f]  ;;  %s867_s11 = sshll.u32 %s1108_s23, 3 }
  0x12   : > { %v283_v7 = vrot.slane %v273_v6, %v282_v5  ;;  %868 = vst.sshfl [vmem:[#allocation2] sm:$0xf pattern:$0x76325410] %v273_v6  ;;  %v276_v8 = vcombine.high %v273_v6, %v273_v6  ;;  %v295_v9 = vcombine.low %v273_v6, %v273_v6  ;;  %v274_v12 = vld [vmem:[%s265_s13] sm:$0x3] }
  0x13   : > { %v319_v13 = vcombine.low %v274_v12, %v274_v12  ;;  %v352_v15 = vrot.slane %v274_v12, %v282_v5 }
  0x14   : > { %332 = vrot.lane.b32.xlu1 %v283_v7, %s960_s29  ;;  %305 = vrot.lane.b32.xlu0 %v283_v7, %s961_s30  ;;  %869 = vst.sshfl [vmem:[#allocation2 + $0x8] sm:$0x3 pattern:$0x76325410] %v276_v8  ;;  %v302_v10 = vrot.slane %v295_v9, %v282_v5  ;;  %v290_v11 = vrot.slane %v276_v8, %v282_v5 }
  0x15   : > { %v326_v14 = vrot.slane %v319_v13, %v282_v5 }
  0x18   : > { %360 = vrot.lane.b32.xlu1 %v283_v7, %s962_s7  ;;  %377 = vrot.lane.b32.xlu0 %v283_v7, %s963_s8 }
  0x1c   : > { %303 = vrot.lane.b32.xlu0 %v302_v10, %s961_s30  ;;  %334 = vrot.lane.b32.xlu1 %v290_v11, %s960_s29 }
  0x20   : > { %358 = vrot.lane.b32.xlu0 %v302_v10, %s962_s7  ;;  %379 = vrot.lane.b32.xlu1 %v290_v11, %s963_s8 }
  0x24   : > { %396 = vrot.lane.b32.xlu0 %v302_v10, %s964_s10  ;;  %398 = vrot.lane.b32.xlu1 %v283_v7, %s964_s10 }
  0x28   : > { %415 = vrot.lane.b32.xlu0 %v283_v7, %s965_s14  ;;  %417 = vrot.lane.b32.xlu1 %v290_v11, %s965_s14 }
  0x2c   : > { %434 = vrot.lane.b32.xlu0 %v302_v10, %s966_s15  ;;  %436 = vrot.lane.b32.xlu1 %v283_v7, %s966_s15 }
  0x30   : > { %453 = vrot.lane.b32.xlu0 %v283_v7, %s967_s16  ;;  %455 = vrot.lane.b32.xlu1 %v290_v11, %s967_s16 }
  0x34   : > { %327 = vrot.lane.b32.xlu0 %v326_v14, %s961_s30  ;;  %353 = vrot.lane.b32.xlu1 %v352_v15, %s960_s29 }
  0x38   : > { %372 = vrot.lane.b32.xlu0 %v326_v14, %s962_s7  ;;  %391 = vrot.lane.b32.xlu1 %v352_v15, %s963_s8 }
  0x3c   : > { %410 = vrot.lane.b32.xlu0 %v326_v14, %s964_s10  ;;  %429 = vrot.lane.b32.xlu1 %v352_v15, %s965_s14  ;;  %s270_s14 = scalar_lea.vmem %s1104_s6, %s867_s11 }
  0x40   : > { %448 = vrot.lane.b32.xlu0 %v326_v14, %s966_s15  ;;  %467 = vrot.lane.b32.xlu1 %v352_v15, %s967_s16 }
  0x44   : > { %492 = vperm.xlu0 %937, %v486_v18   ;;  %497 = vperm.xlu1 %938, %v487_v19  }
  0x48   : > { %507 = vperm.xlu0 %937, %v489_v20   ;;  %502 = vperm.xlu1 %938, %v488_v21  }
  0x4c   : > { %701 = vperm.xlu1 %938, %v698_v22  }
  0x86   : > { %v333_v23 = vpop.permute.xlu1 %332  ;;  %v306_v24 = vpop.permute.xlu0 %305 }
  0x87   : > { %317 = vst.msk [vmem:[#allocation2 + $0x8] sm:$0xc] %vm316_vm1, %v306_v24  ;;  %v336_v29 = vrot.slane %v333_v23, 4  ;;  %v308_v30 = vrot.slane %v306_v24, 4  ;;  %vm465_vm1 = vcmask 730112  }
  0x8a   : > { %v361_v25 = vpop.permute.xlu1 %360  ;;  %v378_v26 = vpop.permute.xlu0 %377 }
  0x8b   : > { %371 = vst.msk [vmem:[#allocation2 + $0x14] sm:$0xc] %vm370_vm2, %v361_v25  ;;  %v363_v39 = vrot.slane %v361_v25, 4  ;;  %v381_v40 = vrot.slane %v378_v26, 4  ;;  %vm460_vm2 = vcmask 736256  }
  0x8e   : > { %v304_v27 = vpop.permute.xlu0 %303  ;;  %v335_v28 = vpop.permute.xlu1 %334 }
  0x8f   : > { %v307_v31 = vrot.slane %v304_v27, 4  ;;  %v337_v32 = vrot.slane %v335_v28, 4  ;;  %345 = vst.msk [vmem:[#allocation2 + $0x14] sm:$0x3] %vm344_vm3, %v335_v28  ;;  %vm330_vm3 = vcmask 1044474   ;;  %v948_v28 = vld [vmem:[%s1100_s2 + $0x8] sm:$0xff]  }
  0x91   : > { %v310_v33 = vsel %vm309_vm4, %v307_v31, %v308_v30  ;;  %v338_v34 = vsel %vm309_vm4, %v336_v29, %v337_v32 }
  0x92   : > { %v312_v35 = vsel %vm311_vm5, %v304_v27, %v310_v33  ;;  %v340_v36 = vsel %vm339_vm6, %v333_v23, %v338_v34  ;;  %v359_v37 = vpop.permute.xlu0 %358  ;;  %v380_v38 = vpop.permute.xlu1 %379  ;;  %vm356_vm5 = vcmask 1042416   ;;  %vm375_vm6 = vcmask 1044338  }
  0x93   : > { %315 = vst [vmem:[#allocation2] sm:$0xcc] %v312_v35  ;;  %343 = vst [vmem:[#allocation2 + $0xc] sm:$0x33] %v340_v36  ;;  %v362_v41 = vrot.slane %v359_v37, 4  ;;  %v382_v42 = vrot.slane %v380_v38, 4 }
  0x94   : > { %390 = vst.msk [vmem:[#allocation2 + $0x20] sm:$0x3] %vm389_vm7, %v380_v38  ;;  %vm394_vm7 = vcmask 1042280  }
  0x95   : > { %v364_v43 = vsel %vm309_vm4, %v362_v41, %v363_v39  ;;  %v383_v44 = vsel %vm309_vm4, %v381_v40, %v382_v42 }
  0x96   : > { %v366_v45 = vsel %vm365_vm8, %v359_v37, %v364_v43  ;;  %v385_v46 = vsel %vm384_vm9, %v378_v26, %v383_v44  ;;  %v397_v47 = vpop.permute.xlu0 %396  ;;  %v399_v48 = vpop.permute.xlu1 %398  ;;  %vm413_vm8 = vcmask 1044322   ;;  %vm432_vm9 = vcmask 1042144  }
  0x97   : > { %369 = vst [vmem:[#allocation2 + $0xc] sm:$0xcc] %v366_v45  ;;  %388 = vst [vmem:[#allocation2 + $0x18] sm:$0x33] %v385_v46  ;;  %v400_v49 = vrot.slane %v397_v47, 4  ;;  %v401_v50 = vrot.slane %v399_v48, 4 }
  0x98   : > { %409 = vst.msk [vmem:[#allocation2 + $0x20] sm:$0xc] %vm408_vm10, %v399_v48  ;;  %vm451_vm10 = vcmask 1044186  }
  0x99   : > { %v402_v51 = vsel %vm309_vm4, %v400_v49, %v401_v50 }
  0x9a   : > { %v404_v52 = vsel %vm403_vm11, %v397_v47, %v402_v51  ;;  %v416_v53 = vpop.permute.xlu0 %415  ;;  %v418_v54 = vpop.permute.xlu1 %417  ;;  %vm470_vm11 = vcmask 1042128  }
  0x9b   : > { %407 = vst [vmem:[#allocation2 + $0x18] sm:$0xcc] %v404_v52  ;;  %v419_v55 = vrot.slane %v416_v53, 4  ;;  %v420_v56 = vrot.slane %v418_v54, 4  ;;  %428 = vst.msk [vmem:[#allocation2 + $0x2c] sm:$0x3] %vm427_vm12, %v418_v54 }
  0x9c   : > { %vm970_vm12 = vmmov 0  }
  0x9d   : > { %v421_v57 = vsel %vm309_vm4, %v419_v55, %v420_v56 }
  0x9e   : > { %v423_v58 = vsel %vm422_vm13, %v416_v53, %v421_v57  ;;  %v435_v59 = vpop.permute.xlu0 %434  ;;  %v437_v60 = vpop.permute.xlu1 %436  ;;  %v940_v61 = vld [vmem:[#allocation2 + $0x4] ss:$12 sps:$4 sm:$0xff]   ;;  %v942_v62 = vld [vmem:[#allocation2] ss:$12 sps:$4 sm:$0xff]  }
  0x9f   : > { %426 = vst [vmem:[#allocation2 + $0x24] sm:$0x33] %v423_v58  ;;  %v438_v63 = vrot.slane %v435_v59, 4  ;;  %v439_v0 = vrot.slane %v437_v60, 4  ;;  %447 = vst.msk [vmem:[#allocation2 + $0x2c] sm:$0xc] %vm446_vm14, %v437_v60  ;;  %577 = vmatprep.subr.bf16.mxu0 %v940_v61 }
  0xa0   : > { %578 = vmatpush1.bf16.msra.mxu0 %v942_v62 }
  0xa1   : > { %v440_v1 = vsel %vm309_vm4, %v438_v63, %v439_v0 }
  0xa2   : > { %v442_v2 = vsel %vm441_vm15, %v435_v59, %v440_v1  ;;  %v454_v3 = vpop.permute.xlu0 %453  ;;  %v456_v4 = vpop.permute.xlu1 %455  ;;  %v480_v12 = vld [vmem:[#allocation2 + $0x18] sm:$0xff] }
  0xa3   : > { %445 = vst [vmem:[#allocation2 + $0x24] sm:$0xcc] %v442_v2  ;;  %v457_v5 = vrot.slane %v454_v3, 4  ;;  %v458_v6 = vrot.slane %v456_v4, 4  ;;  %466 = vst.msk [vmem:[#allocation2 + $0x38] sm:$0x3] %vm465_vm1, %v456_v4 }
  0xa5   : > { %v459_v7 = vsel %vm309_vm4, %v457_v5, %v458_v6  ;;  %vm567_vm4 = vcmask 1041408  }
  0xa6   : > { %v461_v8 = vsel %vm460_vm2, %v454_v3, %v459_v7  ;;  %v328_v9 = vpop.permute.xlu0 %327  ;;  %v354_v10 = vpop.permute.xlu1 %353  ;;  %v691_v7 = vld [vmem:[%s1102_s4] sm:$0xf] }
  0xa7   : > { %464 = vst [vmem:[#allocation2 + $0x30] sm:$0x33] %v461_v8  ;;  %331 = vst.msk [vmem:[#allocation2 + $0x8] sm:$0xc] %vm330_vm3, %v328_v9 }
  0xa8   : > { %357 = vst.msk [vmem:[#allocation2 + $0x14] sm:$0x3] %vm356_vm5, %v354_v10 }
  0xaa   : > { %v373_v11 = vpop.permute.xlu0 %372  ;;  %v482_v13 = vld [vmem:[#allocation2 + $0x24] sm:$0xff]  ;;  %v392_v15 = vpop.permute.xlu1 %391 }
  0xab   : > { %v943_v14 = vld [vmem:[#allocation2 + $0x1c] ss:$12 sps:$4 sm:$0xff]   ;;  %376 = vst.msk [vmem:[#allocation2 + $0x14] sm:$0xc] %vm375_vm6, %v373_v11  ;;  %v875_v18 = vcombine.low %v480_v12, %v482_v13 }
  0xac   : > { %395 = vst.msk [vmem:[#allocation2 + $0x20] sm:$0x3] %vm394_vm7, %v392_v15  ;;  %579 = vmatprep.subr.bf16.mxu0 %v943_v14 }
  0xad   : > { %580 = vmatpush1.bf16.msra.mxu0 %v875_v18 }
  0xae   : > { %v411_v19 = vpop.permute.xlu0 %410  ;;  %v484_v20 = vld [vmem:[#allocation2 + $0x30] sm:$0x33]  ;;  %v430_v21 = vpop.permute.xlu1 %429 }
  0xaf   : > { %414 = vst.msk [vmem:[#allocation2 + $0x20] sm:$0xc] %vm413_vm8, %v411_v19  ;;  %v879_v22 = vcombine.high %v484_v20, %v484_v20  ;;  %v878_v23 = vcombine.low %v484_v20, %v484_v20 }
  0xb0   : > { %433 = vst.msk [vmem:[#allocation2 + $0x2c] sm:$0x3] %vm432_vm9, %v430_v21 }
  0xb1   : > { %881 = vmatprep.subr.msk.bf16.mxu0 %vm567_vm4, %v879_v22  ;;  %v569_v24 = vsel %vm567_vm4, %v878_v23, 0 }
  0xb2   : > { %v449_v25 = vpop.permute.xlu0 %448  ;;  %582 = vmatpush1.bf16.msra.mxu0 %v569_v24  ;;  %v947_v26 = vld [vmem:[#allocation2 + $0x8] ss:$12 sps:$4 sm:$0xff]   ;;  %v468_v27 = vpop.permute.xlu1 %467 }
  0xb3   : > { %452 = vst.msk [vmem:[#allocation2 + $0x2c] sm:$0xc] %vm451_vm10, %v449_v25  ;;  %898 = vmatprep.subr.bf16.mxu1 %v947_v26 }
  0xb4   : > { %471 = vst.msk [vmem:[#allocation2 + $0x38] sm:$0x3] %vm470_vm11, %v468_v27  ;;  %899 = vmatpush3.bf16.msra.mxu1 %v947_v26 }
  0xb5   : > { %882 = vmatmul.mubr.msk.bf16.vlgmr.msra.gmra.mrb[0].mxu0 %vm560_vm0, %v1040_v16  ;;  %v969_v16 = vmov 0.0  }
  0xb6   : > { %619 = vmatprep.mubr.bf16.mxu0 %v968_v17  ;;  %908 = vmatprep.subr.bf16.mxu0 %v969_v16 }
  0xba   : > { %v949_v29 = vld [vmem:[#allocation2 + $0x20] ss:$12 sps:$4 sm:$0xff]  }
  0xbb   : > { %v950_v30 = vld [vmem:[#allocation2 + $0x38] ss:$0 sps:$4 sm:$0x33]   ;;  %900 = vmatprep.subr.bf16.mxu1 %v949_v29 }
  0xbc   : > { %901 = vmatpush3.bf16.msra.mxu1 %v949_v29  ;;  %v575_v31 = vsel %vm567_vm4, %v950_v30, 0 }
  0xbd   : > { %883 = vmatmul.mubr.msk.bf16.gmra.mrb[4].mxu0 %vm560_vm0, %v948_v28  ;;  %916 = vmatprep.subr.msk.bf16.mxu1 %vm567_vm4, %v950_v30 }
  0xbe   : > { %912 = vmatprep.mubr.msk.bf16.mxu0 %vm970_vm12, %v969_v16 }
  0xc0   : > { %903 = vmatpush3.bf16.msra.mxu1 %v575_v31 }
  0xc3   : > { %905 = vmatmul.mubr.msk.bf16.vlgmr.msra.gmra.mrb[0].mxu1 %vm560_vm0, %v948_v28  ;;  %v493_v32 = vpop.permute.xlu0 %492  ;;  %v498_v34 = vpop.permute.xlu1 %497  ;;  %vm704_vm0 = vcmask 261120  }
  0xc4   : > { %740 = vmatprep.mubr.bf16.mxu1 %v968_v17 }
  0xc7   : > { %v503_v46 = vpop.permute.xlu1 %502  ;;  %v508_v48 = vpop.permute.xlu0 %507 }
  0xcb   : > { %v702_v14 = vpop.permute.xlu1 %701 }
 0x188   : > { %v611_v33 = vpop.f32.mrb[0].mxu0 }
 0x189   : > { %v613_v35 = vpop.f32.mrb[1].mxu0  ;;  %v612_v36 = vadd.f32 %v611_v33, %v493_v32 }
 0x18a   : > { %v615_v37 = vpop.f32.mrb[2].mxu0  ;;  %v614_v38 = vadd.f32 %v613_v35, %v493_v32 }
 0x18b   : > { %v679_v39 = vmax.f32 %v612_v36, 0.0  ;;  %v617_v40 = vpop.f32.mrb[3].mxu0  ;;  %v616_v41 = vadd.f32 %v615_v37, %v498_v34 }
 0x18c   : > { %v680_v42 = vmax.f32 %v614_v38, 0.0  ;;  %v618_v43 = vadd.f32 %v617_v40, %v498_v34 }
 0x18d   : > { %v682_v44 = vmax.f32 %v616_v41, 0.0 }
 0x18e   : > { %v683_v45 = vmax.f32 %v618_v43, 0.0 }
 0x18f   : > { %v692_v17 = vpack.c.bf16 %v682_v44, %v679_v39 }
 0x190   : > { %v621_v47 = vpop.f32.mrb[4].mxu0  ;;  %v693_v49 = vpack.c.bf16 %v683_v45, %v680_v42 }
 0x191   : > { %v623_v50 = vpop.f32.mrb[5].mxu0  ;;  %v622_v51 = vadd.f32 %v621_v47, %v503_v46 }
 0x192   : > { %v625_v52 = vpop.f32.mrb[6].mxu0  ;;  %v624_v53 = vadd.f32 %v623_v50, %v503_v46  ;;  %708 = vmatprep.subr.bf16.mxu1 %v693_v49 }
 0x193   : > { %v626_v54 = vadd.f32 %v625_v52, %v508_v48  ;;  %v627_v55 = vpop.f32.mrb[7].mxu0  ;;  %v685_v56 = vmax.f32 %v622_v51, 0.0  ;;  %709 = vmatpush1.bf16.msra.mxu1 %v692_v17 }
 0x194   : > { %v628_v57 = vadd.f32 %v627_v55, %v508_v48  ;;  %v686_v58 = vmax.f32 %v624_v53, 0.0 }
 0x195   : > { %v688_v59 = vmax.f32 %v626_v54, 0.0 }
 0x196   : > { %v689_v60 = vmax.f32 %v628_v57, 0.0  ;;  %v906_v62 = vpop.f32.mrb[0].mxu1 }
 0x197   : > { %v695_v61 = vpack.c.bf16 %v688_v59, %v685_v56  ;;  %v673_v63 = vadd.f32 %v906_v62, %v503_v46  ;;  %v664_v0 = vpop.f32.mrb[1].mxu1 }
 0x198   : > { %v696_v1 = vpack.c.bf16 %v689_v60, %v686_v58  ;;  %v665_v2 = vadd.f32 %v664_v0, %v493_v32  ;;  %v907_v3 = vpop.f32.mrb[2].mxu1 }
 0x199   : > { %v676_v4 = vadd.f32 %v907_v3, %v508_v48  ;;  %v667_v5 = vpop.f32.mrb[3].mxu1  ;;  %v687_v8 = vmax.f32 %v673_v63, 0.0 }
 0x19a   : > { %710 = vmatprep.subr.bf16.mxu1 %v696_v1  ;;  %v668_v6 = vadd.f32 %v667_v5, %v498_v34  ;;  %v681_v10 = vmax.f32 %v665_v2, 0.0 }
 0x19b   : > { %711 = vmatpush1.bf16.msra.mxu1 %v695_v61  ;;  %v690_v9 = vmax.f32 %v676_v4, 0.0 }
 0x19c   : > { %v684_v11 = vmax.f32 %v668_v6, 0.0 }
 0x19d   : > { %v697_v12 = vpack.c.bf16 %v690_v9, %v687_v8 }
 0x19e   : > { %886 = vmatmul.mubr.msk.bf16.vlgmr.msra.gmra.mrb[4].mxu1 %vm704_vm0, %v691_v7  ;;  %v694_v13 = vpack.c.bf16 %v684_v11, %v681_v10 }
 0x1a0   : > { %909 = vmatpush3.bf16.msra.mxu0 %v694_v13 }
 0x1a1   : > { %910 = vmatprep.subr.bf16.mxu0 %v969_v16 }
 0x1a4   : > { %911 = vmatpush3.bf16.msra.mxu0 %v697_v12 }
 0x1a7   : > { %913 = vmatmul.mubr.msk.bf16.vlgmr.msra.gmra.mrb[8].mxu0 %vm704_vm0, %v691_v7 }
 0x271   : > { %v742_v15 = vpop.f32.mrb[4].mxu1 }
 0x272   : > { %v743_v18 = vadd.f32 %v742_v15, %v702_v14  ;;  %v744_v19 = vpop.f32.mrb[5].mxu1 }
 0x273   : > { %v745_v20 = vadd.f32 %v744_v19, %v702_v14  ;;  %v746_v21 = vpop.f32.mrb[6].mxu1 }
 0x274   : > { %789 = vst [vmem:[%s270_s14] sm:$0x7f] %v743_v18  ;;  %v747_v22 = vpop.f32.mrb[7].mxu1 }
 0x275   : > { %790 = vst [vmem:[%s270_s14 + $0x8] sm:$0x7f] %v745_v20 }
 0x27a   : > { %v783_v23 = vpop.f32.mrb[8].mxu0 }
 0x27b   : > { %v784_v24 = vadd.f32 %v783_v23, %v702_v14  ;;  %v914_v25 = vpop.f32.mrb[9].mxu0 }
 0x27c   : > { %v786_v26 = vpop.f32.mrb[10].mxu0 }
 0x27d   : > { %791 = vst [vmem:[%s270_s14 + $0x10] sm:$0x7f] %v784_v24  ;;  %v915_v27 = vpop.f32.mrb[11].mxu0 }
 0x27e PF: > { %s16_s21 = sadd.s32 1, %s957_s21  }
 0x27f   : > { %p13_p6 = scmp.ge.s32.totalorder %s16_s21, 4  }
 0x281   :  { %15 = sbr.rel (!%p13_p6) target bundleno = 1 (0x1), region = 77 }

</bundles_post_ra>
